<compile_context>
chip_gen: v7x
topology: tpu7x:2x2x1
jax: 0.10.0
libtpu: 0.0.40
codegen_flags: <defaults>
</compile_context>

<pallas_src>
import functools

import numpy as np
import jax
import jax.numpy as jnp
from jax.experimental import pallas as pl
from jax.experimental.pallas import tpu as pltpu


# ----------------------------- helpers ------------------------------------- #

def _choose_tile(total, candidates=(1024, 512, 256, 128, 64, 32, 16, 8)):
    """Largest candidate that evenly divides `total` (else the full extent)."""
    for c in candidates:
        if c <= total and total % c == 0:
            return c
    return total


def _cparams(*sems):
    return pltpu.CompilerParams(
        dimension_semantics=sems,
        vmem_limit_bytes=64 * 1024 * 1024,
    )


# ----------------------------- Pallas kernels ------------------------------ #

def _conv1x1_bn_kernel(x_ref, w_ref, s_ref, b_ref, o_ref):
    # (TM, Cin) @ (Cin, Cout) on MXU (bf16 in, f32 acc), BN epilogue in f32.
    y = jnp.dot(x_ref[...], w_ref[...], preferred_element_type=jnp.float32)
    y = y * s_ref[...] + b_ref[...]
    o_ref[...] = y.astype(o_ref.dtype)


def _branch_conv_kernel(xp_ref, w_ref, s_ref, b_ref, fea_ref, gsum_ref,
                        *, K, off, H, W):
    # Grouped KxK conv (dense block-diagonal per-tap weights) + BN + ReLU +
    # per-image spatial sum (GAP numerator), all on one halo-padded image tile.
    # xp_ref: (1, Hp, Wp, C) bf16; w_ref: (K*K, C, C) bf16 (VMEM-resident);
    # fea_ref: (1, H*W, C) bf16; gsum_ref: (1, 1, C) f32.
    HW = H * W
    C = w_ref.shape[-1]
    acc = jnp.zeros((HW, C), jnp.float32)
    for kh in range(K):
        for kw in range(K):
            patch = xp_ref[0, off + kh:off + kh + H, off + kw:off + kw + W, :]
            patch = patch.reshape(HW, C)
            acc = acc + jnp.dot(patch, w_ref[kh * K + kw],
                                preferred_element_type=jnp.float32)
    y = acc * s_ref[...] + b_ref[...]
    y = jnp.maximum(y, 0.0)
    fea_ref[0] = y.astype(fea_ref.dtype)
    gsum_ref[0] = jnp.sum(y, axis=0, keepdims=True)


def _sk_attention_kernel(gsum_ref, wz_ref, bz_ref, wa_ref, ba_ref, attn_ref,
                         *, M, inv_hw):
    # Entire SK attention tail in one tiny kernel (all f32):
    #   fea_s  = mean_{H,W}(sum_m branch_m)   (from per-branch partial sums)
    #   fea_z  = fea_s @ wz + bz              (nn.Linear, no BN/ReLU per spec)
    #   logit_m = fea_z @ wa_m + ba_m ; softmax over m
    # gsum_ref: (M, N, C); wz: (C, d); bz: (1, d); wa: (M, d, C); ba: (M, 1, C)
    # attn_ref: (M, N, C) -- one leading-dim store per branch (no lane concat).
    fea_s = gsum_ref[0]
    for m in range(1, M):
        fea_s = fea_s + gsum_ref[m]
    fea_s = fea_s * inv_hw
    fea_z = jnp.dot(fea_s, wz_ref[...],
                    preferred_element_type=jnp.float32) + bz_ref[...]
    logits = [jnp.dot(fea_z, wa_ref[m], preferred_element_type=jnp.float32)
              + ba_ref[m] for m in range(M)]
    mx = logits[0]
    for m in range(1, M):
        mx = jnp.maximum(mx, logits[m])
    exps = [jnp.exp(l - mx) for l in logits]
    den = exps[0]
    for m in range(1, M):
        den = den + exps[m]
    inv_den = 1.0 / den
    for m in range(M):
        attn_ref[m] = exps[m] * inv_den


def _fuse_out_kernel(feas_ref, attn_ref, x_ref, w3_ref, s3_ref, b3_ref,
                     wsc_ref, ssc_ref, bsc_ref, o_ref, *, M):
    # Branch-weighted sum + folded (BN -> 1x1 conv -> BN) + shortcut conv + BN +
    # residual add, on a (TR rows) tile of one image.
    # feas_ref: (M, 1, TR, C) bf16; attn_ref: (1, M, C) f32; x_ref: (1, TR, Cin) bf16.
    attn = attn_ref[0]                                        # (M, C) f32
    fv = feas_ref[0, 0].astype(jnp.float32) * attn[0:1, :]
    for m in range(1, M):
        fv = fv + feas_ref[m, 0].astype(jnp.float32) * attn[m:m + 1, :]
    y = jnp.dot(fv.astype(jnp.bfloat16), w3_ref[...],
                preferred_element_type=jnp.float32)
    y = y * s3_ref[...] + b3_ref[...]
    sc = jnp.dot(x_ref[0], wsc_ref[...], preferred_element_type=jnp.float32)
    sc = sc * ssc_ref[...] + bsc_ref[...]
    o_ref[0] = y + sc


# ------------------------------ kernel wrappers ----------------------------- #

def conv1x1_bn(x, w, scale, bias, out_dtype=jnp.bfloat16):
    """(P, Cin) -> (P, Cout): row-tiled 1x1 conv + folded BN."""
    P, Cin = x.shape
    Cout = w.shape[1]
    tm = _choose_tile(P)
    return pl.pallas_call(
        _conv1x1_bn_kernel,
        grid=(P // tm,),
        out_shape=jax.ShapeDtypeStruct((P, Cout), out_dtype),
        in_specs=[
            pl.BlockSpec((tm, Cin), lambda i: (i, 0)),
            pl.BlockSpec((Cin, Cout), lambda i: (0, 0)),   # weights VMEM-resident
            pl.BlockSpec((1, Cout), lambda i: (0, 0)),
            pl.BlockSpec((1, Cout), lambda i: (0, 0)),
        ],
        out_specs=pl.BlockSpec((tm, Cout), lambda i: (i, 0)),
        compiler_params=_cparams("parallel"),
    )(x, w, scale, bias)


def branch_conv_bn_relu(xp, w_taps, scale, bias, *, K, off, H, W):
    """Grouped KxK conv + BN + ReLU + per-image GAP partial sum, per batch element."""
    N, Hp, Wp, C = xp.shape
    HW = H * W
    kern = functools.partial(_branch_conv_kernel, K=K, off=off, H=H, W=W)
    return pl.pallas_call(
        kern,
        grid=(N,),
        out_shape=(jax.ShapeDtypeStruct((N, HW, C), jnp.bfloat16),
                   jax.ShapeDtypeStruct((N, 1, C), jnp.float32)),
        in_specs=[
            pl.BlockSpec((1, Hp, Wp, C), lambda n: (n, 0, 0, 0)),
            pl.BlockSpec((K * K, C, C), lambda n: (0, 0, 0)),  # resident taps
            pl.BlockSpec((1, C), lambda n: (0, 0)),
            pl.BlockSpec((1, C), lambda n: (0, 0)),
        ],
        out_specs=(pl.BlockSpec((1, HW, C), lambda n: (n, 0, 0)),
                   pl.BlockSpec((1, 1, C), lambda n: (n, 0, 0))),
        compiler_params=_cparams("parallel"),
    )(xp, w_taps, scale, bias)


def sk_attention(gsums, wz, bz, wa, ba, *, inv_hw):
    """(M, N, C) branch GAP partial sums -> (M, N, C) softmaxed attention."""
    M, N, C = gsums.shape
    d = wz.shape[1]
    kern = functools.partial(_sk_attention_kernel, M=M, inv_hw=inv_hw)
    return pl.pallas_call(
        kern,
        grid=(1,),
        out_shape=jax.ShapeDtypeStruct((M, N, C), jnp.float32),
        in_specs=[
            pl.BlockSpec((M, N, C), lambda i: (0, 0, 0)),
            pl.BlockSpec((C, d), lambda i: (0, 0)),
            pl.BlockSpec((1, d), lambda i: (0, 0)),
            pl.BlockSpec((M, d, C), lambda i: (0, 0, 0)),
            pl.BlockSpec((M, 1, C), lambda i: (0, 0, 0)),
        ],
        out_specs=pl.BlockSpec((M, N, C), lambda i: (0, 0, 0)),
        compiler_params=_cparams("arbitrary"),
    )(gsums, wz, bz, wa, ba)


def sk_fuse_project_residual(feas, attn, x_img, w3, s3, b3, wsc, ssc, bsc):
    """Fused fea_v + final projection + shortcut + residual, tiled over (N, HW)."""
    M, N, HW, C = feas.shape
    Cin = x_img.shape[-1]
    Cout = w3.shape[1]
    tr = _choose_tile(HW)
    kern = functools.partial(_fuse_out_kernel, M=M)
    return pl.pallas_call(
        kern,
        grid=(N, HW // tr),
        out_shape=jax.ShapeDtypeStruct((N, HW, Cout), jnp.float32),
        in_specs=[
            pl.BlockSpec((M, 1, tr, C), lambda n, r: (0, n, r, 0)),
            pl.BlockSpec((1, M, C), lambda n, r: (n, 0, 0)),
            pl.BlockSpec((1, tr, Cin), lambda n, r: (n, r, 0)),
            pl.BlockSpec((C, Cout), lambda n, r: (0, 0)),
            pl.BlockSpec((1, Cout), lambda n, r: (0, 0)),
            pl.BlockSpec((1, Cout), lambda n, r: (0, 0)),
            pl.BlockSpec((Cin, Cout), lambda n, r: (0, 0)),
            pl.BlockSpec((1, Cout), lambda n, r: (0, 0)),
            pl.BlockSpec((1, Cout), lambda n, r: (0, 0)),
        ],
        out_specs=pl.BlockSpec((1, tr, Cout), lambda n, r: (n, r, 0)),
        compiler_params=_cparams("parallel", "parallel"),
    )(feas, attn, x_img, w3, s3, b3, wsc, ssc, bsc)


# ------------------------------ parameter setup ----------------------------- #

def _bn_fold(gamma, beta, mean, var, eps=1e-5):
    s = gamma / np.sqrt(var + eps)
    return s.astype(np.float32), (beta - mean * s).astype(np.float32)


def _grouped_conv_tap_weights(w, G):
    # w: (Cout, Cin//G, K, K) -> per-tap dense (K*K, Cin, Cout), block-diagonal
    # over groups (matches torch.nn.Conv2d(groups=G)).
    # TODO(synk): at production channel counts use per-group matmuls instead of
    # the dense block-diagonal expansion (G x wasted MXU FLOPs).
    Cout, cg, K, _ = w.shape
    Cin = cg * G
    og = Cout // G
    Wt = np.zeros((K * K, Cin, Cout), np.float32)
    for oc in range(Cout):
        g = oc // og
        for kh in range(K):
            for kw in range(K):
                Wt[kh * K + kw, g * cg:(g + 1) * cg, oc] = w[oc, :, kh, kw]
    return Wt


def init_params(key, in_features, out_features, M, G, r, L=32):
    mid = out_features // 2
    d = max(int(mid / r), L)
    ks = list(jax.random.split(key, 64))

    def rnd(shape, s=0.1):
        return np.asarray(jax.random.normal(ks.pop(), shape), np.float32) * s

    def bn(c):
        gamma = (1.0 + rnd((c,), 0.05)).astype(np.float32)
        beta = rnd((c,), 0.05)
        mean = rnd((c,), 0.05)
        var = (1.0 + np.abs(rnd((c,), 0.05))).astype(np.float32)
        return _bn_fold(gamma, beta, mean, var)

    p = dict(mid=mid, d=d, M=M, out=out_features)

    # head: Conv2d(in, mid, 1) + BN(mid)
    w1 = rnd((mid, in_features, 1, 1)); b1 = rnd((mid,))
    s1, sh1 = bn(mid)
    p['w1'] = jnp.asarray(w1[:, :, 0, 0].T, jnp.bfloat16)
    p['s1'] = jnp.asarray(s1.reshape(1, mid))
    p['b1'] = jnp.asarray((b1 * s1 + sh1).reshape(1, mid))

    # SKConv branch convs: grouped KxK conv + BN (+ ReLU in kernel)
    p['wb'], p['sb'], p['bb'] = [], [], []
    for i in range(M):
        K = 3 + 2 * i
        wb = rnd((mid, mid // G, K, K)); bb = rnd((mid,))
        sb, shb = bn(mid)
        p['wb'].append(jnp.asarray(_grouped_conv_tap_weights(wb, G), jnp.bfloat16))
        p['sb'].append(jnp.asarray(sb.reshape(1, mid)))
        p['bb'].append(jnp.asarray((bb * sb + shb).reshape(1, mid)))

    # SK attention: fc (mid -> d) and fcs (d -> mid), plain nn.Linear per spec
    wz = rnd((d, mid)); bz = rnd((d,))
    p['wz'] = jnp.asarray(wz.T)
    p['bz'] = jnp.asarray(bz.reshape(1, d))
    wa = np.stack([rnd((mid, d)).T for _ in range(M)], axis=0)       # (M, d, mid)
    ba = np.stack([rnd((mid,)) for _ in range(M)], axis=0).reshape(M, 1, mid)
    p['wa'] = jnp.asarray(wa)
    p['ba'] = jnp.asarray(ba)

    # BN(mid) -> Conv2d(mid, out, 1) -> BN(out), folded into one matmul
    s2, sh2 = bn(mid)
    w3 = rnd((out_features, mid, 1, 1)); b3 = rnd((out_features,))
    s3, sh3 = bn(out_features)
    W3d = w3[:, :, 0, 0].T                                           # (mid, out)
    p['w3'] = jnp.asarray(s2[:, None] * W3d, jnp.bfloat16)
    p['s3'] = jnp.asarray(s3.reshape(1, out_features))
    p['b3'] = jnp.asarray(((sh2 @ W3d + b3) * s3 + sh3).reshape(1, out_features))

    # shortcut: Conv2d(in, out, 1) + BN (in_features != out_features here)
    wsc = rnd((out_features, in_features, 1, 1)); bsc = rnd((out_features,))
    ssc, shsc = bn(out_features)
    p['wsc'] = jnp.asarray(wsc[:, :, 0, 0].T, jnp.bfloat16)
    p['ssc'] = jnp.asarray(ssc.reshape(1, out_features))
    p['bsc'] = jnp.asarray((bsc * ssc + shsc).reshape(1, out_features))
    return p


# --------------------------------- forward ---------------------------------- #

def sk_unit_forward(x_nchw, p):
    # TODO(synk): stride > 1 branch/shortcut convs and the identity shortcut
    # (in_features == out_features) are not implemented (demo uses stride=1,
    # in != out, matching the module defaults used here).
    x = jnp.transpose(x_nchw, (0, 2, 3, 1))                     # NCHW -> NHWC
    N, H, W, Cin = x.shape
    P, HW = N * H * W, H * W
    mid, M, Cout = p['mid'], p['M'], p['out']

    x_bf16 = x.astype(jnp.bfloat16)
    x_flat = x_bf16.reshape(P, Cin)

    # 1x1 conv + BN (row-tiled)
    h1 = conv1x1_bn(x_flat, p['w1'], p['s1'], p['b1'])          # (P, mid) bf16
    h1_img = h1.reshape(N, H, W, mid)

    # SKConv branches: grouped KxK conv + BN + ReLU + GAP partial sums, all
    # inside one kernel per branch (no HBM im2col).  Pad once with the max halo
    # and let smaller-K branches read the interior.
    pad_max = M                                                  # = 1 + (M - 1)
    xp = jnp.pad(h1_img, ((0, 0), (pad_max, pad_max), (pad_max, pad_max), (0, 0)))
    feas_list, gsum_list = [], []
    for i in range(M):
        K = 3 + 2 * i
        off = pad_max - (1 + i)
        fea, gsum = branch_conv_bn_relu(xp, p['wb'][i], p['sb'][i], p['bb'][i],
                                        K=K, off=off, H=H, W=W)
        feas_list.append(fea)
        gsum_list.append(gsum.reshape(N, mid))
    feas = jnp.stack(feas_list, axis=0)                         # (M, N, HW, mid) bf16
    gsums = jnp.stack(gsum_list, axis=0)                        # (M, N, mid)    f32

    # SK attention tail (GAP combine + fc + per-branch fcs + softmax): one kernel
    attn = sk_attention(gsums, p['wz'], p['bz'], p['wa'], p['ba'], inv_hw=1.0 / HW)
    attn = jnp.transpose(attn, (1, 0, 2))                       # (N, M, mid) f32

    # branch-weighted sum + folded BN/1x1/BN + shortcut conv+BN + residual add
    x_img = x_bf16.reshape(N, HW, Cin)
    out = sk_fuse_project_residual(feas, attn, x_img,
                                   p['w3'], p['s3'], p['b3'],
                                   p['wsc'], p['ssc'], p['bsc'])  # (N, HW, Cout) f32
    return jnp.transpose(out.reshape(N, H, W, Cout), (0, 3, 1, 2))  # back to NCHW


# ------------------------------ pure-JAX reference --------------------------- #

def sk_unit_reference(x_nchw, p):
    """f32 XLA reference using the same folded parameters (for correctness check)."""
    x = jnp.transpose(x_nchw, (0, 2, 3, 1)).astype(jnp.float32)
    N, H, W, Cin = x.shape
    HW = H * W
    mid, M, Cout = p['mid'], p['M'], p['out']

    h1 = (x.reshape(-1, Cin) @ p['w1'].astype(jnp.float32)) * p['s1'] + p['b1']
    h1 = h1.reshape(N, H, W, mid)
    pad_max = M
    xp = jnp.pad(h1, ((0, 0), (pad_max, pad_max), (pad_max, pad_max), (0, 0)))

    feas = []
    for i in range(M):
        K = 3 + 2 * i
        off = pad_max - (1 + i)
        Wt = p['wb'][i].astype(jnp.float32)
        acc = jnp.zeros((N, H, W, mid), jnp.float32)
        for kh in range(K):
            for kw in range(K):
                patch = xp[:, off + kh:off + kh + H, off + kw:off + kw + W, :]
                acc = acc + jnp.einsum('nhwc,cd->nhwd', patch, Wt[kh * K + kw])
        feas.append(jnp.maximum(acc * p['sb'][i] + p['bb'][i], 0.0))
    feas = jnp.stack(feas, axis=0)                               # (M, N, H, W, mid)

    fea_s = feas.sum(0).mean(axis=(1, 2))                        # (N, mid)
    fea_z = fea_s @ p['wz'] + p['bz']                            # (N, d)
    logits = jnp.stack([fea_z @ p['wa'][m] + p['ba'][m] for m in range(M)], axis=1)
    attn = jax.nn.softmax(logits, axis=1)                        # (N, M, mid)

    fv = (feas.reshape(M, N, HW, mid)
          * jnp.transpose(attn, (1, 0, 2))[:, :, None, :]).sum(0)  # (N, HW, mid)
    y3 = (fv @ p['w3'].astype(jnp.float32)) * p['s3'] + p['b3']
    sc = (x.reshape(-1, Cin) @ p['wsc'].astype(jnp.float32)) * p['ssc'] + p['bsc']
    out = y3 + sc.reshape(N, HW, Cout)
    return jnp.transpose(out.reshape(N, H, W, Cout), (0, 3, 1, 2))


if __name__ == "__main__":
    key = jax.random.PRNGKey(0)
    k_x, k_p = jax.random.split(key)

    in_features, out_features = 16, 32    # mid = 16, d = max(16 // 2, 32) = 32
    M, G, r = 2, 4, 2
    N, Hs, Ws = 2, 16, 16

    params = init_params(k_p, in_features, out_features, M, G, r)
    x = jax.random.normal(k_x, (N, in_features, Hs, Ws), jnp.float32)

    y = sk_unit_forward(x, params)
    jax.block_until_ready(y)
    assert y.shape == (N, out_features, Hs, Ws)
    assert bool(jnp.all(jnp.isfinite(y)))

    # Correctness check vs. an f32 XLA reference (loose tolerance: bf16 MXU inputs).
    y_ref = sk_unit_reference(x, params)
    np.testing.assert_allclose(np.asarray(y, np.float32),
                               np.asarray(y_ref, np.float32),
                               rtol=0.1, atol=0.1)
    print("KERNEL_OK")
</pallas_src>

<mosaic_0001>
module attributes {stable_mosaic.version = 11 : i64} {
  func.func @_conv1x1_bn_kernel(%arg0: i32, %arg1: memref<512x16xbf16, #tpu.memory_space<vmem>>, %arg2: memref<16x16xbf16, #tpu.memory_space<vmem>>, %arg3: memref<1x16xf32, #tpu.memory_space<vmem>>, %arg4: memref<1x16xf32, #tpu.memory_space<vmem>>, %arg5: memref<512x16xbf16, #tpu.memory_space<vmem>>) attributes {dimension_semantics = [#tpu.dimension_semantics<parallel>], iteration_bounds = array<i64: 1>, scalar_prefetch = 0 : i64, scratch_operands = 0 : i64, tpu.core_type = #tpu.core_type<tc>, window_params = [{transform_indices = @transform_0, window_bounds = array<i64: 512, 16>}, {pipeline_mode = #tpu.pipeline_mode<synchronous>, transform_indices = @transform_1, window_bounds = array<i64: 16, 16>}, {pipeline_mode = #tpu.pipeline_mode<synchronous>, transform_indices = @transform_2, window_bounds = array<i64: 1, 16>}, {pipeline_mode = #tpu.pipeline_mode<synchronous>, transform_indices = @transform_3, window_bounds = array<i64: 1, 16>}, {transform_indices = @transform_4, window_bounds = array<i64: 512, 16>}]} {
    %c0 = arith.constant 0 : index
    %c0_0 = arith.constant 0 : index
    %0 = vector.load %arg1[%c0, %c0_0] : memref<512x16xbf16, #tpu.memory_space<vmem>>, vector<512x16xbf16>
    %c0_1 = arith.constant 0 : index
    %c0_2 = arith.constant 0 : index
    %1 = vector.load %arg2[%c0_1, %c0_2] : memref<16x16xbf16, #tpu.memory_space<vmem>>, vector<16x16xbf16>
    %cst = arith.constant dense<0.000000e+00> : vector<512x16xf32>
    %2 = tpu.matmul %0, %1, %cst {dimension_numbers = #tpu.dot_dimension_numbers<[1], [0], [0], [1], [0, 0, 1, 1], [], []>} : vector<512x16xbf16>, vector<16x16xbf16>, vector<512x16xf32> -> vector<512x16xf32>
    %c0_3 = arith.constant 0 : index
    %c0_4 = arith.constant 0 : index
    %3 = vector.load %arg3[%c0_3, %c0_4] : memref<1x16xf32, #tpu.memory_space<vmem>>, vector<1x16xf32>
    %4 = vector.broadcast %3 : vector<1x16xf32> to vector<512x16xf32>
    %5 = arith.mulf %2, %4 : vector<512x16xf32>
    %c0_5 = arith.constant 0 : index
    %c0_6 = arith.constant 0 : index
    %6 = vector.load %arg4[%c0_5, %c0_6] : memref<1x16xf32, #tpu.memory_space<vmem>>, vector<1x16xf32>
    %7 = vector.broadcast %6 : vector<1x16xf32> to vector<512x16xf32>
    %8 = arith.addf %5, %7 : vector<512x16xf32>
    %9 = arith.truncf %8 : vector<512x16xf32> to vector<512x16xbf16>
    %c0_7 = arith.constant 0 : index
    %c0_8 = arith.constant 0 : index
    %10 = vector.load %arg5[%c0_7, %c0_8] : memref<512x16xbf16, #tpu.memory_space<vmem>>, vector<512x16xbf16>
    tpu.vector_store %arg5[%c0_7, %c0_8], %9 {strides = array<i32>} : memref<512x16xbf16, #tpu.memory_space<vmem>>, vector<512x16xbf16>,
    return
  }
  func.func @transform_0(%arg0: i32) -> (i32, i32) {
    %c0_i32 = arith.constant 0 : i32
    %c0_i32_0 = arith.constant 0 : i32
    return %arg0, %c0_i32 : i32, i32
  }
  func.func @transform_1(%arg0: i32) -> (i32, i32) {
    %c0_i32 = arith.constant 0 : i32
    %c0_i32_0 = arith.constant 0 : i32
    %c0_i32_1 = arith.constant 0 : i32
    return %c0_i32, %c0_i32_0 : i32, i32
  }
  func.func @transform_2(%arg0: i32) -> (i32, i32) {
    %c0_i32 = arith.constant 0 : i32
    %c0_i32_0 = arith.constant 0 : i32
    %c0_i32_1 = arith.constant 0 : i32
    return %c0_i32, %c0_i32_0 : i32, i32
  }
  func.func @transform_3(%arg0: i32) -> (i32, i32) {
    %c0_i32 = arith.constant 0 : i32
    %c0_i32_0 = arith.constant 0 : i32
    %c0_i32_1 = arith.constant 0 : i32
    return %c0_i32, %c0_i32_0 : i32, i32
  }
  func.func @transform_4(%arg0: i32) -> (i32, i32) {
    %c0_i32 = arith.constant 0 : i32
    %c0_i32_0 = arith.constant 0 : i32
    return %arg0, %c0_i32 : i32, i32
  }
}

</mosaic_0001>

<bundles_post_ra>
// kernel: tpu_custom_call.1
= control target key start
LH: loop header
LB: loop body
LE: loop exit
PB: predicated region body
PF: predicated region fallthrough
CT: control target
= control target key end

     0   :  { %9 = vsyncpa [#allocation3], 0  ;;  %s1960_s0 = inlined_call_operand.hbm [shape: bf16[512,16], index: 0, kind: input, shape index: {}]   ;;  %s1961_s1 = inlined_call_operand.hbm [shape: bf16[16,16], index: 1, kind: input, shape index: {}]   ;;  %s1962_s2 = inlined_call_operand.hbm [shape: f32[1,16], index: 2, kind: input, shape index: {}]   ;;  %s1963_s3 = inlined_call_operand.hbm [shape: f32[1,16], index: 3, kind: input, shape index: {}]   ;;  %s1964_s4 = inlined_call_operand.hbm [shape: bf16[512,16], index: 4, kind: output, shape index: {}]  }
   0x1   :  { %10 = vsyncpa [#allocation6], 0 }
   0x2   :  { %11 = vsyncpa [#allocation9], 0 }
   0x3   :  { %12 = vsyncpa [#allocation4], 0  ;;  %s1624_s15 = smov [#allocation5]   ;;  %s1625_s17 = smov [#allocation2]  }
   0x4   :  { %s30_s16 = sshll.u32 %s1624_s15, 4  ;;  %s18_s18 = sshll.u32 %s1625_s17, 4  ;;  %s31_s16 = int_to_ptr.vmem [resolvable:$true] %s30_s16  ;;  %s1656_s18 = int_to_ptr.vmem [resolvable:$true] %s18_s18 }
   0x5   :  { %s1506_s21 = scalar_lea.hbm %s1961_s1, 128 }
   0x6   :  { %p1507_p0 = scmp.ne.s32.totalorder %s1961_s1, %s1506_s21  ;;  %p1510_p1 = scmp.lt.u32.totalorder %s1506_s21, %s1961_s1 }
   0x8   :  { %p1512_p2 = pnand %p1510_p1, %p1507_p0 }
   0xa   :  { %1515 = shalt.err (!%p1512_p2)
}
   0xb   :  { %s1516_s26 = scalar_lea.vmem %s31_s16, 128  ;;  %p1521_p4 = scmp.lt.s32.totalorder %s31_s16, %s31_s16 }
   0xc   :  { %p1517_p3 = scmp.ne.s32.totalorder %s31_s16, %s1516_s26  ;;  %p1522_p5 = scmp.lt.s32.totalorder %s1516_s26, %s1516_s26 }
   0xe   :  { %p1523_p6 = por %p1522_p5, %p1521_p4 }
  0x10   :  { %p1524_p7 = pnand %p1523_p6, %p1517_p3 }
  0x12   :  { %1527 = shalt.err (!%p1524_p7)
}
  0x13   :  { %s1626_s27 = smov 64   ;;  %s1627_s28 = smov 4  }
  0x14   :  { %36 = dma.hbm_to_vmem [thread:$0]  %s1961_s1, 128, %s31_s16, [#allocation6], %s1626_s27, %s1626_s27, %s1627_s28  }
  0x15   :  { %s1528_s7 = scalar_lea.hbm %s1960_s0, 4096 }
  0x16   :  { %p1529_p8 = scmp.ne.s32.totalorder %s1960_s0, %s1528_s7  ;;  %p1532_p9 = scmp.lt.u32.totalorder %s1528_s7, %s1960_s0 }
  0x18   :  { %p1534_p10 = pnand %p1532_p9, %p1529_p8 }
  0x1a   :  { %1537 = shalt.err (!%p1534_p10)
}
  0x1b   :  { %s1538_s12 = scalar_lea.vmem %s1656_s18, 4096  ;;  %p1543_p12 = scmp.lt.s32.totalorder %s1656_s18, %s1656_s18 }
  0x1c   :  { %p1539_p11 = scmp.ne.s32.totalorder %s1656_s18, %s1538_s12  ;;  %p1544_p13 = scmp.lt.s32.totalorder %s1538_s12, %s1538_s12 }
  0x1e   :  { %p1545_p0 = por %p1544_p13, %p1543_p12 }
  0x20   :  { %p1546_p1 = pnand %p1545_p0, %p1539_p11 }
  0x22   :  { %1549 = shalt.err (!%p1546_p1)
}
  0x23   :  { %24 = dma.hbm_to_vmem [thread:$0]  %s1960_s0, 4096, %s1656_s18, [#allocation3], %s1626_s27, %s1626_s27, %s1627_s28  }
  0x24   :  { %s1628_s14 = smov [#allocation7]   ;;  %s1629_s16 = smov [#allocation8]  }
  0x25   :  { %s43_s15 = sshll.u32 %s1628_s14, 4  ;;  %s53_s17 = sshll.u32 %s1629_s16, 4  ;;  %s44_s15 = int_to_ptr.vmem [resolvable:$true] %s43_s15  ;;  %s54_s17 = int_to_ptr.vmem [resolvable:$true] %s53_s17 }
  0x26   :  { %s1550_s21 = scalar_lea.hbm %s1962_s2, 16 }
  0x27   :  { %p1551_p2 = scmp.ne.s32.totalorder %s1962_s2, %s1550_s21  ;;  %p1554_p3 = scmp.lt.u32.totalorder %s1550_s21, %s1962_s2 }
  0x29   :  { %p1556_p4 = pnand %p1554_p3, %p1551_p2 }
  0x2b   :  { %1559 = shalt.err (!%p1556_p4)
}
  0x2c   :  { %s1560_s0 = scalar_lea.vmem %s44_s15, 16  ;;  %s1564_s18 = scalar_lea.vmem %s44_s15, 32 }
  0x2d   :  { %p1561_p5 = scmp.ne.s32.totalorder %s44_s15, %s1560_s0  ;;  %p1565_p6 = scmp.lt.s32.totalorder %s44_s15, %s44_s15 }
  0x2e   :  { %p1566_p7 = scmp.lt.s32.totalorder %s1564_s18, %s1560_s0 }
  0x30   :  { %p1567_p8 = por %p1566_p7, %p1565_p6 }
  0x32   :  { %p1568_p9 = pnand %p1567_p8, %p1561_p5 }
  0x34   :  { %1571 = shalt.err (!%p1568_p9)
}
  0x35   :  { %46 = dma.hbm_to_vmem [thread:$0]  %s1962_s2, 16, %s44_s15, [#allocation6]  }
  0x36   :  { %s1572_s6 = scalar_lea.hbm %s1963_s3, 16 }
  0x37   :  { %p1573_p10 = scmp.ne.s32.totalorder %s1963_s3, %s1572_s6  ;;  %p1576_p11 = scmp.lt.u32.totalorder %s1572_s6, %s1963_s3 }
  0x39   :  { %p1578_p12 = pnand %p1576_p11, %p1573_p10 }
  0x3b   :  { %1581 = shalt.err (!%p1578_p12)
}
  0x3c   :  { %s1582_s11 = scalar_lea.vmem %s54_s17, 16  ;;  %s1586_s12 = scalar_lea.vmem %s54_s17, 32 }
  0x3d   :  { %p1583_p13 = scmp.ne.s32.totalorder %s54_s17, %s1582_s11  ;;  %p1587_p0 = scmp.lt.s32.totalorder %s54_s17, %s54_s17 }
  0x3e   :  { %p1588_p1 = scmp.lt.s32.totalorder %s1586_s12, %s1582_s11 }
  0x40   :  { %p1589_p2 = por %p1588_p1, %p1587_p0 }
  0x42   :  { %p1590_p3 = pnand %p1589_p2, %p1583_p13 }
  0x44   :  { %1593 = shalt.err (!%p1590_p3)
}
  0x45   :  { %56 = dma.hbm_to_vmem [thread:$0]  %s1963_s3, 16, %s54_s17, [#allocation9]  }
  0x46   :  { %1616 = dma.done.wait [#allocation3], 4096  }
  0x47   :  { %1617 = vsyncadd [#allocation3], 4294963200 }
  0x48   :  { %1618 = dma.done.wait [#allocation6], 144  }
  0x49   :  { %1619 = vsyncadd [#allocation6], 4294967152 }
  0x4a   :  { %1620 = dma.done.wait [#allocation9], 16  }
  0x4b   :  { %1621 = vsyncadd [#allocation9], 4294967280  ;;  %v1473_v0 = vld [vmem:[#allocation5] sm:$0xff]   ;;  %vm302_vm0 = vcmask 130048   ;;  %v1476_v3 = vld [vmem:[#allocation2 + $0x8] sm:$0xff]   ;;  %vm1086_vm1 = vcmask 125952  }
  0x4c   :  { %v1474_v1 = vld [vmem:[#allocation2] sm:$0xff]   ;;  %1398 = vmatprep.subr.bf16.mxu0 %v1473_v0  ;;  %1464 = vmatprep.subr.bf16.mxu1 %v1473_v0  ;;  %v1477_v4 = vld [vmem:[#allocation2 + $0x88] sm:$0xff]   ;;  %v1478_v5 = vld [vmem:[#allocation2 + $0x10] sm:$0xff]   ;;  %s1630_s3 = smov [#allocation10]  }
  0x4d   :  { %v1475_v2 = vld [vmem:[#allocation2 + $0x80] sm:$0xff]   ;;  %1399 = vmatpush3.bf16.msra.mxu0 %v1473_v0  ;;  %1465 = vmatpush3.bf16.msra.mxu1 %v1473_v0  ;;  %v1479_v6 = vld [vmem:[#allocation2 + $0x90] sm:$0xff]   ;;  %v1480_v7 = vld [vmem:[#allocation2 + $0x18] sm:$0xff]   ;;  %s1156_s13 = sshll.u32 %s1630_s3, 4  ;;  %s1157_s13 = int_to_ptr.vmem [resolvable:$true] %s1156_s13 }
  0x4e   :  { %1400 = vmatprep.mubr.msk.bf16.mxu0 %vm302_vm0, %v1474_v1  ;;  %1432 = vmatprep.mubr.msk.bf16.mxu1 %vm302_vm0, %v1475_v2  ;;  %v1481_v8 = vld [vmem:[#allocation2 + $0x98] sm:$0xff]   ;;  %v1482_v9 = vld [vmem:[#allocation2 + $0x20] sm:$0xff]   ;;  %v1484_v11 = vld [vmem:[#allocation2 + $0x28] sm:$0xff]   ;;  %s1594_s14 = scalar_lea.vmem %s1157_s13, 4096  ;;  %p1599_p5 = scmp.lt.s32.totalorder %s1157_s13, %s1157_s13 }
  0x4f   :  { %v1483_v10 = vld [vmem:[#allocation2 + $0xa0] sm:$0xff]   ;;  %v1485_v12 = vld [vmem:[#allocation2 + $0xa8] sm:$0xff]   ;;  %v1486_v13 = vld [vmem:[#allocation2 + $0x30] sm:$0xff]   ;;  %p1595_p4 = scmp.ne.s32.totalorder %s1157_s13, %s1594_s14  ;;  %p1600_p6 = scmp.lt.s32.totalorder %s1594_s14, %s1594_s14 }
  0x50   :  { %1401 = vmatmul.mubr.msk.bf16.vlgmr.msra.gmra.mrb[0].mxu0 %vm302_vm0, %v1476_v3  ;;  %1433 = vmatmul.mubr.msk.bf16.vlgmr.msra.gmra.mrb[0].mxu1 %vm302_vm0, %v1477_v4  ;;  %v1487_v14 = vld [vmem:[#allocation2 + $0xb0] sm:$0xff]   ;;  %v1488_v15 = vld [vmem:[#allocation2 + $0x38] sm:$0xff]   ;;  %v1490_v17 = vld [vmem:[#allocation2 + $0x40] sm:$0xff]  }
  0x51   :  { %1404 = vmatprep.mubr.msk.bf16.mxu0 %vm302_vm0, %v1478_v5  ;;  %1436 = vmatprep.mubr.msk.bf16.mxu1 %vm302_vm0, %v1479_v6  ;;  %v1489_v16 = vld [vmem:[#allocation2 + $0xb8] sm:$0xff]   ;;  %v1491_v18 = vld [vmem:[#allocation2 + $0xc0] sm:$0xff]   ;;  %v1492_v19 = vld [vmem:[#allocation2 + $0x48] sm:$0xff]   ;;  %p1601_p7 = por %p1600_p6, %p1599_p5 }
  0x52   :  { %v1493_v20 = vld [vmem:[#allocation2 + $0xc8] sm:$0xff]   ;;  %v1494_v21 = vld [vmem:[#allocation2 + $0x50] sm:$0xff]   ;;  %v1496_v23 = vld [vmem:[#allocation2 + $0x58] sm:$0xff]  }
  0x53   :  { %v1495_v22 = vld [vmem:[#allocation2 + $0xd0] sm:$0xff]   ;;  %v1497_v24 = vld [vmem:[#allocation2 + $0xd8] sm:$0xff]   ;;  %v1498_v25 = vld [vmem:[#allocation2 + $0x60] sm:$0xff]   ;;  %p1602_p8 = pnand %p1601_p7, %p1595_p4 }
  0x54   :  { %v1499_v26 = vld [vmem:[#allocation2 + $0xe0] sm:$0xff]   ;;  %v1500_v27 = vld [vmem:[#allocation2 + $0x68] sm:$0xff]   ;;  %v1502_v29 = vld [vmem:[#allocation2 + $0x70] sm:$0xff]  }
  0x55   :  { %v1501_v28 = vld [vmem:[#allocation2 + $0xe8] sm:$0xff]   ;;  %v1503_v30 = vld [vmem:[#allocation2 + $0xf0] sm:$0xff]   ;;  %v1504_v31 = vld [vmem:[#allocation2 + $0x78] sm:$0xff]  }
  0x56   :  { %v1505_v32 = vld [vmem:[#allocation2 + $0xf8] sm:$0xff]   ;;  %v1749_v33 = vld [vmem:[#allocation7] ss:$0 sm:$0xff]  ;;  %v1751_v35 = vld [vmem:[#allocation8] ss:$0 sm:$0xff] }
  0x58   :  { %1405 = vmatmul.mubr.msk.bf16.gmra.mrb[4].mxu0 %vm302_vm0, %v1480_v7  ;;  %1437 = vmatmul.mubr.msk.bf16.gmra.mrb[4].mxu1 %vm302_vm0, %v1481_v8 }
  0x59   :  { %1408 = vmatprep.mubr.msk.bf16.mxu0 %vm302_vm0, %v1482_v9  ;;  %1440 = vmatprep.mubr.msk.bf16.mxu1 %vm302_vm0, %v1483_v10 }
  0x60   :  { %1409 = vmatmul.mubr.msk.bf16.gmra.mrb[8].mxu0 %vm302_vm0, %v1484_v11  ;;  %1441 = vmatmul.mubr.msk.bf16.gmra.mrb[8].mxu1 %vm302_vm0, %v1485_v12 }
  0x61   :  { %1412 = vmatprep.mubr.msk.bf16.mxu0 %vm302_vm0, %v1486_v13  ;;  %1444 = vmatprep.mubr.msk.bf16.mxu1 %vm302_vm0, %v1487_v14 }
  0x68   :  { %1413 = vmatmul.mubr.msk.bf16.gmra.mrb[12].mxu0 %vm302_vm0, %v1488_v15  ;;  %1445 = vmatmul.mubr.msk.bf16.gmra.mrb[12].mxu1 %vm302_vm0, %v1489_v16 }
  0x69   :  { %1416 = vmatprep.mubr.msk.bf16.mxu0 %vm302_vm0, %v1490_v17  ;;  %1448 = vmatprep.mubr.msk.bf16.mxu1 %vm302_vm0, %v1491_v18 }
  0x70   :  { %1417 = vmatmul.mubr.msk.bf16.gmra.mrb[16].mxu0 %vm302_vm0, %v1492_v19  ;;  %1449 = vmatmul.mubr.msk.bf16.gmra.mrb[16].mxu1 %vm302_vm0, %v1493_v20 }
  0x71   :  { %1420 = vmatprep.mubr.msk.bf16.mxu0 %vm302_vm0, %v1494_v21  ;;  %1452 = vmatprep.mubr.msk.bf16.mxu1 %vm302_vm0, %v1495_v22 }
  0x78   :  { %1421 = vmatmul.mubr.msk.bf16.gmra.mrb[20].mxu0 %vm302_vm0, %v1496_v23  ;;  %1453 = vmatmul.mubr.msk.bf16.gmra.mrb[20].mxu1 %vm302_vm0, %v1497_v24 }
  0x79   :  { %1424 = vmatprep.mubr.msk.bf16.mxu0 %vm302_vm0, %v1498_v25  ;;  %1456 = vmatprep.mubr.msk.bf16.mxu1 %vm302_vm0, %v1499_v26 }
  0x80   :  { %1425 = vmatmul.mubr.msk.bf16.gmra.mrb[24].mxu0 %vm302_vm0, %v1500_v27  ;;  %1457 = vmatmul.mubr.msk.bf16.gmra.mrb[24].mxu1 %vm302_vm0, %v1501_v28 }
  0x81   :  { %1428 = vmatprep.mubr.msk.bf16.mxu0 %vm302_vm0, %v1502_v29  ;;  %1460 = vmatprep.mubr.msk.bf16.mxu1 %vm302_vm0, %v1503_v30 }
  0x88   :  { %1429 = vmatmul.mubr.msk.bf16.gmra.mrb[28].mxu0 %vm302_vm0, %v1504_v31  ;;  %1461 = vmatmul.mubr.msk.bf16.gmra.mrb[28].mxu1 %vm302_vm0, %v1505_v32 }
 0x123   :  { %v1402_v34 = vpop.f32.mrb[0].mxu0  ;;  %v1434_v36 = vpop.f32.mrb[0].mxu1 }
 0x124   :  { %v697_v37 = vmul.f32 %v1402_v34, %v1749_v33  ;;  %v729_v38 = vmul.f32 %v1434_v36, %v1749_v33  ;;  %v433_v39 = vpop.f32.mrb[1].mxu0  ;;  %v561_v40 = vpop.f32.mrb[1].mxu1 }
 0x125   :  { %v695_v41 = vmul.f32 %v1749_v33, %v433_v39  ;;  %v727_v42 = vmul.f32 %v1749_v33, %v561_v40  ;;  %v1403_v43 = vpop.f32.mrb[2].mxu0  ;;  %v1435_v44 = vpop.f32.mrb[2].mxu1 }
 0x126   :  { %v768_v45 = vadd.f32 %v1751_v35, %v697_v37  ;;  %v800_v46 = vadd.f32 %v1751_v35, %v729_v38  ;;  %v698_v47 = vmul.f32 %v1403_v43, %v1749_v33  ;;  %v730_v48 = vmul.f32 %v1435_v44, %v1749_v33  ;;  %v436_v49 = vpop.f32.mrb[3].mxu0  ;;  %v564_v50 = vpop.f32.mrb[3].mxu1 }
 0x127   :  { %v766_v51 = vadd.f32 %v1751_v35, %v695_v41  ;;  %v798_v52 = vadd.f32 %v1751_v35, %v727_v42  ;;  %v696_v53 = vmul.f32 %v1749_v33, %v436_v49  ;;  %v728_v54 = vmul.f32 %v1749_v33, %v564_v50 }
 0x128   :  { %v1303_v55 = vpack.c.bf16 %v768_v45, %v768_v45  ;;  %v1335_v56 = vpack.c.bf16 %v800_v46, %v800_v46  ;;  %v769_v57 = vadd.f32 %v1751_v35, %v698_v47  ;;  %v801_v58 = vadd.f32 %v1751_v35, %v730_v48 }
 0x129   :  { %v1301_v59 = vpack.c.bf16 %v766_v51, %v766_v51  ;;  %v1333_v60 = vpack.c.bf16 %v798_v52, %v798_v52  ;;  %v767_v61 = vadd.f32 %v1751_v35, %v696_v53  ;;  %v799_v62 = vadd.f32 %v1751_v35, %v728_v54 }
 0x12a   :  { %1089 = vst.msk [vmem:[#allocation10 + $0x8] sm:$0xf] %vm1086_vm1, %v1303_v55  ;;  %1121 = vst.msk [vmem:[#allocation10 + $0x88] sm:$0xf] %vm1086_vm1, %v1335_v56  ;;  %v1304_v63 = vpack.c.bf16 %v769_v57, %v769_v57  ;;  %v1336_v0 = vpack.c.bf16 %v801_v58, %v801_v58 }
 0x12b   :  { %1087 = vst.msk [vmem:[#allocation10] sm:$0xf] %vm1086_vm1, %v1301_v59  ;;  %1119 = vst.msk [vmem:[#allocation10 + $0x80] sm:$0xf] %vm1086_vm1, %v1333_v60  ;;  %v1302_v1 = vpack.c.bf16 %v767_v61, %v767_v61  ;;  %v1334_v2 = vpack.c.bf16 %v799_v62, %v799_v62  ;;  %v1406_v3 = vpop.f32.mrb[4].mxu0  ;;  %v1438_v4 = vpop.f32.mrb[4].mxu1 }
 0x12c   :  { %1090 = vst.msk [vmem:[#allocation10 + $0xc] sm:$0xf] %vm1086_vm1, %v1304_v63  ;;  %1122 = vst.msk [vmem:[#allocation10 + $0x8c] sm:$0xf] %vm1086_vm1, %v1336_v0  ;;  %v701_v5 = vmul.f32 %v1406_v3, %v1749_v33  ;;  %v733_v6 = vmul.f32 %v1438_v4, %v1749_v33  ;;  %v449_v7 = vpop.f32.mrb[5].mxu0  ;;  %v577_v8 = vpop.f32.mrb[5].mxu1 }
 0x12d   :  { %1088 = vst.msk [vmem:[#allocation10 + $0x4] sm:$0xf] %vm1086_vm1, %v1302_v1  ;;  %1120 = vst.msk [vmem:[#allocation10 + $0x84] sm:$0xf] %vm1086_vm1, %v1334_v2  ;;  %v699_v9 = vmul.f32 %v1749_v33, %v449_v7  ;;  %v731_v10 = vmul.f32 %v1749_v33, %v577_v8  ;;  %v1407_v11 = vpop.f32.mrb[6].mxu0  ;;  %v1439_v12 = vpop.f32.mrb[6].mxu1 }
 0x12e   :  { %v772_v13 = vadd.f32 %v1751_v35, %v701_v5  ;;  %v804_v14 = vadd.f32 %v1751_v35, %v733_v6  ;;  %v702_v15 = vmul.f32 %v1407_v11, %v1749_v33  ;;  %v734_v16 = vmul.f32 %v1439_v12, %v1749_v33  ;;  %v452_v17 = vpop.f32.mrb[7].mxu0  ;;  %v580_v18 = vpop.f32.mrb[7].mxu1 }
 0x12f   :  { %v770_v19 = vadd.f32 %v1751_v35, %v699_v9  ;;  %v802_v20 = vadd.f32 %v1751_v35, %v731_v10  ;;  %v700_v21 = vmul.f32 %v1749_v33, %v452_v17  ;;  %v732_v22 = vmul.f32 %v1749_v33, %v580_v18 }
 0x130   :  { %v1307_v23 = vpack.c.bf16 %v772_v13, %v772_v13  ;;  %v1339_v24 = vpack.c.bf16 %v804_v14, %v804_v14  ;;  %v773_v25 = vadd.f32 %v1751_v35, %v702_v15  ;;  %v805_v26 = vadd.f32 %v1751_v35, %v734_v16 }
 0x131   :  { %v1305_v27 = vpack.c.bf16 %v770_v19, %v770_v19  ;;  %v1337_v28 = vpack.c.bf16 %v802_v20, %v802_v20  ;;  %v771_v29 = vadd.f32 %v1751_v35, %v700_v21  ;;  %v803_v30 = vadd.f32 %v1751_v35, %v732_v22 }
 0x132   :  { %1093 = vst.msk [vmem:[#allocation10 + $0x18] sm:$0xf] %vm1086_vm1, %v1307_v23  ;;  %1125 = vst.msk [vmem:[#allocation10 + $0x98] sm:$0xf] %vm1086_vm1, %v1339_v24  ;;  %v1308_v31 = vpack.c.bf16 %v773_v25, %v773_v25  ;;  %v1340_v32 = vpack.c.bf16 %v805_v26, %v805_v26 }
 0x133   :  { %1091 = vst.msk [vmem:[#allocation10 + $0x10] sm:$0xf] %vm1086_vm1, %v1305_v27  ;;  %1123 = vst.msk [vmem:[#allocation10 + $0x90] sm:$0xf] %vm1086_vm1, %v1337_v28  ;;  %v1306_v34 = vpack.c.bf16 %v771_v29, %v771_v29  ;;  %v1338_v36 = vpack.c.bf16 %v803_v30, %v803_v30  ;;  %v1410_v37 = vpop.f32.mrb[8].mxu0  ;;  %v1442_v38 = vpop.f32.mrb[8].mxu1 }
 0x134   :  { %1094 = vst.msk [vmem:[#allocation10 + $0x1c] sm:$0xf] %vm1086_vm1, %v1308_v31  ;;  %1126 = vst.msk [vmem:[#allocation10 + $0x9c] sm:$0xf] %vm1086_vm1, %v1340_v32  ;;  %v705_v39 = vmul.f32 %v1410_v37, %v1749_v33  ;;  %v737_v40 = vmul.f32 %v1442_v38, %v1749_v33  ;;  %v465_v41 = vpop.f32.mrb[9].mxu0  ;;  %v593_v42 = vpop.f32.mrb[9].mxu1 }
 0x135   :  { %1092 = vst.msk [vmem:[#allocation10 + $0x14] sm:$0xf] %vm1086_vm1, %v1306_v34  ;;  %1124 = vst.msk [vmem:[#allocation10 + $0x94] sm:$0xf] %vm1086_vm1, %v1338_v36  ;;  %v703_v43 = vmul.f32 %v1749_v33, %v465_v41  ;;  %v735_v44 = vmul.f32 %v1749_v33, %v593_v42  ;;  %v1411_v45 = vpop.f32.mrb[10].mxu0  ;;  %v1443_v46 = vpop.f32.mrb[10].mxu1 }
 0x136   :  { %v776_v47 = vadd.f32 %v1751_v35, %v705_v39  ;;  %v808_v48 = vadd.f32 %v1751_v35, %v737_v40  ;;  %v706_v49 = vmul.f32 %v1411_v45, %v1749_v33  ;;  %v738_v50 = vmul.f32 %v1443_v46, %v1749_v33  ;;  %v468_v51 = vpop.f32.mrb[11].mxu0  ;;  %v596_v52 = vpop.f32.mrb[11].mxu1 }
 0x137   :  { %v774_v53 = vadd.f32 %v1751_v35, %v703_v43  ;;  %v806_v54 = vadd.f32 %v1751_v35, %v735_v44  ;;  %v704_v55 = vmul.f32 %v1749_v33, %v468_v51  ;;  %v736_v56 = vmul.f32 %v1749_v33, %v596_v52 }
 0x138   :  { %v1311_v57 = vpack.c.bf16 %v776_v47, %v776_v47  ;;  %v1343_v58 = vpack.c.bf16 %v808_v48, %v808_v48  ;;  %v777_v59 = vadd.f32 %v1751_v35, %v706_v49  ;;  %v809_v60 = vadd.f32 %v1751_v35, %v738_v50 }
 0x139   :  { %v1309_v61 = vpack.c.bf16 %v774_v53, %v774_v53  ;;  %v1341_v62 = vpack.c.bf16 %v806_v54, %v806_v54  ;;  %v775_v63 = vadd.f32 %v1751_v35, %v704_v55  ;;  %v807_v0 = vadd.f32 %v1751_v35, %v736_v56 }
 0x13a   :  { %1097 = vst.msk [vmem:[#allocation10 + $0x28] sm:$0xf] %vm1086_vm1, %v1311_v57  ;;  %1129 = vst.msk [vmem:[#allocation10 + $0xa8] sm:$0xf] %vm1086_vm1, %v1343_v58  ;;  %v1312_v1 = vpack.c.bf16 %v777_v59, %v777_v59  ;;  %v1344_v2 = vpack.c.bf16 %v809_v60, %v809_v60 }
 0x13b   :  { %1095 = vst.msk [vmem:[#allocation10 + $0x20] sm:$0xf] %vm1086_vm1, %v1309_v61  ;;  %1127 = vst.msk [vmem:[#allocation10 + $0xa0] sm:$0xf] %vm1086_vm1, %v1341_v62  ;;  %v1310_v3 = vpack.c.bf16 %v775_v63, %v775_v63  ;;  %v1342_v4 = vpack.c.bf16 %v807_v0, %v807_v0  ;;  %v1414_v5 = vpop.f32.mrb[12].mxu0  ;;  %v1446_v6 = vpop.f32.mrb[12].mxu1 }
 0x13c   :  { %1098 = vst.msk [vmem:[#allocation10 + $0x2c] sm:$0xf] %vm1086_vm1, %v1312_v1  ;;  %1130 = vst.msk [vmem:[#allocation10 + $0xac] sm:$0xf] %vm1086_vm1, %v1344_v2  ;;  %v709_v7 = vmul.f32 %v1414_v5, %v1749_v33  ;;  %v741_v8 = vmul.f32 %v1446_v6, %v1749_v33  ;;  %v481_v9 = vpop.f32.mrb[13].mxu0  ;;  %v609_v10 = vpop.f32.mrb[13].mxu1 }
 0x13d   :  { %1096 = vst.msk [vmem:[#allocation10 + $0x24] sm:$0xf] %vm1086_vm1, %v1310_v3  ;;  %1128 = vst.msk [vmem:[#allocation10 + $0xa4] sm:$0xf] %vm1086_vm1, %v1342_v4  ;;  %v707_v11 = vmul.f32 %v1749_v33, %v481_v9  ;;  %v739_v12 = vmul.f32 %v1749_v33, %v609_v10  ;;  %v1415_v13 = vpop.f32.mrb[14].mxu0  ;;  %v1447_v14 = vpop.f32.mrb[14].mxu1 }
 0x13e   :  { %v780_v15 = vadd.f32 %v1751_v35, %v709_v7  ;;  %v812_v16 = vadd.f32 %v1751_v35, %v741_v8  ;;  %v710_v17 = vmul.f32 %v1415_v13, %v1749_v33  ;;  %v742_v18 = vmul.f32 %v1447_v14, %v1749_v33  ;;  %v484_v19 = vpop.f32.mrb[15].mxu0  ;;  %v612_v20 = vpop.f32.mrb[15].mxu1 }
 0x13f   :  { %v778_v21 = vadd.f32 %v1751_v35, %v707_v11  ;;  %v810_v22 = vadd.f32 %v1751_v35, %v739_v12  ;;  %v708_v23 = vmul.f32 %v1749_v33, %v484_v19  ;;  %v740_v24 = vmul.f32 %v1749_v33, %v612_v20 }
 0x140   :  { %v1315_v25 = vpack.c.bf16 %v780_v15, %v780_v15  ;;  %v1347_v26 = vpack.c.bf16 %v812_v16, %v812_v16  ;;  %v781_v27 = vadd.f32 %v1751_v35, %v710_v17  ;;  %v813_v28 = vadd.f32 %v1751_v35, %v742_v18 }
 0x141   :  { %v1313_v29 = vpack.c.bf16 %v778_v21, %v778_v21  ;;  %v1345_v30 = vpack.c.bf16 %v810_v22, %v810_v22  ;;  %v779_v31 = vadd.f32 %v1751_v35, %v708_v23  ;;  %v811_v32 = vadd.f32 %v1751_v35, %v740_v24 }
 0x142   :  { %1101 = vst.msk [vmem:[#allocation10 + $0x38] sm:$0xf] %vm1086_vm1, %v1315_v25  ;;  %1133 = vst.msk [vmem:[#allocation10 + $0xb8] sm:$0xf] %vm1086_vm1, %v1347_v26  ;;  %v1316_v34 = vpack.c.bf16 %v781_v27, %v781_v27  ;;  %v1348_v36 = vpack.c.bf16 %v813_v28, %v813_v28 }
 0x143   :  { %1099 = vst.msk [vmem:[#allocation10 + $0x30] sm:$0xf] %vm1086_vm1, %v1313_v29  ;;  %1131 = vst.msk [vmem:[#allocation10 + $0xb0] sm:$0xf] %vm1086_vm1, %v1345_v30  ;;  %v1314_v37 = vpack.c.bf16 %v779_v31, %v779_v31  ;;  %v1346_v38 = vpack.c.bf16 %v811_v32, %v811_v32  ;;  %v1418_v39 = vpop.f32.mrb[16].mxu0  ;;  %v1450_v40 = vpop.f32.mrb[16].mxu1 }
 0x144   :  { %1102 = vst.msk [vmem:[#allocation10 + $0x3c] sm:$0xf] %vm1086_vm1, %v1316_v34  ;;  %1134 = vst.msk [vmem:[#allocation10 + $0xbc] sm:$0xf] %vm1086_vm1, %v1348_v36  ;;  %v713_v41 = vmul.f32 %v1418_v39, %v1749_v33  ;;  %v745_v42 = vmul.f32 %v1450_v40, %v1749_v33  ;;  %v497_v43 = vpop.f32.mrb[17].mxu0  ;;  %v625_v44 = vpop.f32.mrb[17].mxu1 }
 0x145   :  { %1100 = vst.msk [vmem:[#allocation10 + $0x34] sm:$0xf] %vm1086_vm1, %v1314_v37  ;;  %1132 = vst.msk [vmem:[#allocation10 + $0xb4] sm:$0xf] %vm1086_vm1, %v1346_v38  ;;  %v711_v45 = vmul.f32 %v1749_v33, %v497_v43  ;;  %v743_v46 = vmul.f32 %v1749_v33, %v625_v44  ;;  %v1419_v47 = vpop.f32.mrb[18].mxu0  ;;  %v1451_v48 = vpop.f32.mrb[18].mxu1 }
 0x146   :  { %v784_v49 = vadd.f32 %v1751_v35, %v713_v41  ;;  %v816_v50 = vadd.f32 %v1751_v35, %v745_v42  ;;  %v714_v51 = vmul.f32 %v1419_v47, %v1749_v33  ;;  %v746_v52 = vmul.f32 %v1451_v48, %v1749_v33  ;;  %v500_v53 = vpop.f32.mrb[19].mxu0  ;;  %v628_v54 = vpop.f32.mrb[19].mxu1 }
 0x147   :  { %v782_v55 = vadd.f32 %v1751_v35, %v711_v45  ;;  %v814_v56 = vadd.f32 %v1751_v35, %v743_v46  ;;  %v712_v57 = vmul.f32 %v1749_v33, %v500_v53  ;;  %v744_v58 = vmul.f32 %v1749_v33, %v628_v54 }
 0x148   :  { %v1319_v59 = vpack.c.bf16 %v784_v49, %v784_v49  ;;  %v1351_v60 = vpack.c.bf16 %v816_v50, %v816_v50  ;;  %v785_v61 = vadd.f32 %v1751_v35, %v714_v51  ;;  %v817_v62 = vadd.f32 %v1751_v35, %v746_v52 }
 0x149   :  { %v1317_v63 = vpack.c.bf16 %v782_v55, %v782_v55  ;;  %v1349_v0 = vpack.c.bf16 %v814_v56, %v814_v56  ;;  %v783_v1 = vadd.f32 %v1751_v35, %v712_v57  ;;  %v815_v2 = vadd.f32 %v1751_v35, %v744_v58 }
 0x14a   :  { %1105 = vst.msk [vmem:[#allocation10 + $0x48] sm:$0xf] %vm1086_vm1, %v1319_v59  ;;  %1137 = vst.msk [vmem:[#allocation10 + $0xc8] sm:$0xf] %vm1086_vm1, %v1351_v60  ;;  %v1320_v3 = vpack.c.bf16 %v785_v61, %v785_v61  ;;  %v1352_v4 = vpack.c.bf16 %v817_v62, %v817_v62 }
 0x14b   :  { %1103 = vst.msk [vmem:[#allocation10 + $0x40] sm:$0xf] %vm1086_vm1, %v1317_v63  ;;  %1135 = vst.msk [vmem:[#allocation10 + $0xc0] sm:$0xf] %vm1086_vm1, %v1349_v0  ;;  %v1318_v5 = vpack.c.bf16 %v783_v1, %v783_v1  ;;  %v1350_v6 = vpack.c.bf16 %v815_v2, %v815_v2  ;;  %v1422_v7 = vpop.f32.mrb[20].mxu0  ;;  %v1454_v8 = vpop.f32.mrb[20].mxu1 }
 0x14c   :  { %1106 = vst.msk [vmem:[#allocation10 + $0x4c] sm:$0xf] %vm1086_vm1, %v1320_v3  ;;  %1138 = vst.msk [vmem:[#allocation10 + $0xcc] sm:$0xf] %vm1086_vm1, %v1352_v4  ;;  %v717_v9 = vmul.f32 %v1422_v7, %v1749_v33  ;;  %v749_v10 = vmul.f32 %v1454_v8, %v1749_v33  ;;  %v513_v11 = vpop.f32.mrb[21].mxu0  ;;  %v641_v12 = vpop.f32.mrb[21].mxu1 }
 0x14d   :  { %1104 = vst.msk [vmem:[#allocation10 + $0x44] sm:$0xf] %vm1086_vm1, %v1318_v5  ;;  %1136 = vst.msk [vmem:[#allocation10 + $0xc4] sm:$0xf] %vm1086_vm1, %v1350_v6  ;;  %v715_v13 = vmul.f32 %v1749_v33, %v513_v11  ;;  %v747_v14 = vmul.f32 %v1749_v33, %v641_v12  ;;  %v1423_v15 = vpop.f32.mrb[22].mxu0  ;;  %v1455_v16 = vpop.f32.mrb[22].mxu1 }
 0x14e   :  { %v788_v17 = vadd.f32 %v1751_v35, %v717_v9  ;;  %v820_v18 = vadd.f32 %v1751_v35, %v749_v10  ;;  %v718_v19 = vmul.f32 %v1423_v15, %v1749_v33  ;;  %v750_v20 = vmul.f32 %v1455_v16, %v1749_v33  ;;  %v516_v21 = vpop.f32.mrb[23].mxu0  ;;  %v644_v22 = vpop.f32.mrb[23].mxu1 }
 0x14f   :  { %v786_v23 = vadd.f32 %v1751_v35, %v715_v13  ;;  %v818_v24 = vadd.f32 %v1751_v35, %v747_v14  ;;  %v716_v25 = vmul.f32 %v1749_v33, %v516_v21  ;;  %v748_v26 = vmul.f32 %v1749_v33, %v644_v22 }
 0x150   :  { %v1323_v27 = vpack.c.bf16 %v788_v17, %v788_v17  ;;  %v1355_v28 = vpack.c.bf16 %v820_v18, %v820_v18  ;;  %v789_v29 = vadd.f32 %v1751_v35, %v718_v19  ;;  %v821_v30 = vadd.f32 %v1751_v35, %v750_v20 }
 0x151   :  { %v1321_v31 = vpack.c.bf16 %v786_v23, %v786_v23  ;;  %v1353_v32 = vpack.c.bf16 %v818_v24, %v818_v24  ;;  %v787_v34 = vadd.f32 %v1751_v35, %v716_v25  ;;  %v819_v36 = vadd.f32 %v1751_v35, %v748_v26 }
 0x152   :  { %1109 = vst.msk [vmem:[#allocation10 + $0x58] sm:$0xf] %vm1086_vm1, %v1323_v27  ;;  %1141 = vst.msk [vmem:[#allocation10 + $0xd8] sm:$0xf] %vm1086_vm1, %v1355_v28  ;;  %v1324_v37 = vpack.c.bf16 %v789_v29, %v789_v29  ;;  %v1356_v38 = vpack.c.bf16 %v821_v30, %v821_v30 }
 0x153   :  { %1107 = vst.msk [vmem:[#allocation10 + $0x50] sm:$0xf] %vm1086_vm1, %v1321_v31  ;;  %1139 = vst.msk [vmem:[#allocation10 + $0xd0] sm:$0xf] %vm1086_vm1, %v1353_v32  ;;  %v1322_v39 = vpack.c.bf16 %v787_v34, %v787_v34  ;;  %v1354_v40 = vpack.c.bf16 %v819_v36, %v819_v36  ;;  %v1426_v41 = vpop.f32.mrb[24].mxu0  ;;  %v1458_v42 = vpop.f32.mrb[24].mxu1 }
 0x154   :  { %1110 = vst.msk [vmem:[#allocation10 + $0x5c] sm:$0xf] %vm1086_vm1, %v1324_v37  ;;  %1142 = vst.msk [vmem:[#allocation10 + $0xdc] sm:$0xf] %vm1086_vm1, %v1356_v38  ;;  %v721_v43 = vmul.f32 %v1426_v41, %v1749_v33  ;;  %v753_v44 = vmul.f32 %v1458_v42, %v1749_v33  ;;  %v529_v45 = vpop.f32.mrb[25].mxu0  ;;  %v657_v46 = vpop.f32.mrb[25].mxu1 }
 0x155   :  { %1108 = vst.msk [vmem:[#allocation10 + $0x54] sm:$0xf] %vm1086_vm1, %v1322_v39  ;;  %1140 = vst.msk [vmem:[#allocation10 + $0xd4] sm:$0xf] %vm1086_vm1, %v1354_v40  ;;  %v719_v47 = vmul.f32 %v1749_v33, %v529_v45  ;;  %v751_v48 = vmul.f32 %v1749_v33, %v657_v46  ;;  %v1427_v49 = vpop.f32.mrb[26].mxu0  ;;  %v1459_v50 = vpop.f32.mrb[26].mxu1 }
 0x156   :  { %v792_v51 = vadd.f32 %v1751_v35, %v721_v43  ;;  %v824_v52 = vadd.f32 %v1751_v35, %v753_v44  ;;  %v722_v53 = vmul.f32 %v1427_v49, %v1749_v33  ;;  %v754_v54 = vmul.f32 %v1459_v50, %v1749_v33  ;;  %v532_v55 = vpop.f32.mrb[27].mxu0  ;;  %v660_v56 = vpop.f32.mrb[27].mxu1 }
 0x157   :  { %v790_v57 = vadd.f32 %v1751_v35, %v719_v47  ;;  %v822_v58 = vadd.f32 %v1751_v35, %v751_v48  ;;  %v720_v59 = vmul.f32 %v1749_v33, %v532_v55  ;;  %v752_v60 = vmul.f32 %v1749_v33, %v660_v56 }
 0x158   :  { %v1327_v61 = vpack.c.bf16 %v792_v51, %v792_v51  ;;  %v1359_v62 = vpack.c.bf16 %v824_v52, %v824_v52  ;;  %v793_v63 = vadd.f32 %v1751_v35, %v722_v53  ;;  %v825_v0 = vadd.f32 %v1751_v35, %v754_v54 }
 0x159   :  { %v1325_v1 = vpack.c.bf16 %v790_v57, %v790_v57  ;;  %v1357_v2 = vpack.c.bf16 %v822_v58, %v822_v58  ;;  %v791_v3 = vadd.f32 %v1751_v35, %v720_v59  ;;  %v823_v4 = vadd.f32 %v1751_v35, %v752_v60 }
 0x15a   :  { %1113 = vst.msk [vmem:[#allocation10 + $0x68] sm:$0xf] %vm1086_vm1, %v1327_v61  ;;  %1145 = vst.msk [vmem:[#allocation10 + $0xe8] sm:$0xf] %vm1086_vm1, %v1359_v62  ;;  %v1328_v5 = vpack.c.bf16 %v793_v63, %v793_v63  ;;  %v1360_v6 = vpack.c.bf16 %v825_v0, %v825_v0 }
 0x15b   :  { %1111 = vst.msk [vmem:[#allocation10 + $0x60] sm:$0xf] %vm1086_vm1, %v1325_v1  ;;  %1143 = vst.msk [vmem:[#allocation10 + $0xe0] sm:$0xf] %vm1086_vm1, %v1357_v2  ;;  %v1326_v7 = vpack.c.bf16 %v791_v3, %v791_v3  ;;  %v1358_v8 = vpack.c.bf16 %v823_v4, %v823_v4  ;;  %v1430_v9 = vpop.f32.mrb[28].mxu0  ;;  %v1462_v10 = vpop.f32.mrb[28].mxu1 }
 0x15c   :  { %1114 = vst.msk [vmem:[#allocation10 + $0x6c] sm:$0xf] %vm1086_vm1, %v1328_v5  ;;  %1146 = vst.msk [vmem:[#allocation10 + $0xec] sm:$0xf] %vm1086_vm1, %v1360_v6  ;;  %v725_v11 = vmul.f32 %v1430_v9, %v1749_v33  ;;  %v757_v12 = vmul.f32 %v1462_v10, %v1749_v33  ;;  %v545_v13 = vpop.f32.mrb[29].mxu0  ;;  %v673_v14 = vpop.f32.mrb[29].mxu1 }
 0x15d   :  { %1112 = vst.msk [vmem:[#allocation10 + $0x64] sm:$0xf] %vm1086_vm1, %v1326_v7  ;;  %1144 = vst.msk [vmem:[#allocation10 + $0xe4] sm:$0xf] %vm1086_vm1, %v1358_v8  ;;  %v723_v15 = vmul.f32 %v1749_v33, %v545_v13  ;;  %v755_v16 = vmul.f32 %v1749_v33, %v673_v14  ;;  %v1431_v17 = vpop.f32.mrb[30].mxu0  ;;  %v1463_v18 = vpop.f32.mrb[30].mxu1 }
 0x15e   :  { %v796_v19 = vadd.f32 %v1751_v35, %v725_v11  ;;  %v828_v20 = vadd.f32 %v1751_v35, %v757_v12  ;;  %v726_v21 = vmul.f32 %v1431_v17, %v1749_v33  ;;  %v758_v22 = vmul.f32 %v1463_v18, %v1749_v33  ;;  %v548_v23 = vpop.f32.mrb[31].mxu0  ;;  %v676_v24 = vpop.f32.mrb[31].mxu1 }
 0x15f   :  { %v794_v25 = vadd.f32 %v1751_v35, %v723_v15  ;;  %v826_v26 = vadd.f32 %v1751_v35, %v755_v16  ;;  %v724_v27 = vmul.f32 %v1749_v33, %v548_v23  ;;  %v756_v28 = vmul.f32 %v1749_v33, %v676_v24 }
 0x160   :  { %v1331_v29 = vpack.c.bf16 %v796_v19, %v796_v19  ;;  %v1363_v30 = vpack.c.bf16 %v828_v20, %v828_v20  ;;  %v797_v31 = vadd.f32 %v1751_v35, %v726_v21  ;;  %v829_v32 = vadd.f32 %v1751_v35, %v758_v22 }
 0x161   :  { %v1329_v34 = vpack.c.bf16 %v794_v25, %v794_v25  ;;  %v1361_v36 = vpack.c.bf16 %v826_v26, %v826_v26  ;;  %v795_v37 = vadd.f32 %v1751_v35, %v724_v27  ;;  %v827_v38 = vadd.f32 %v1751_v35, %v756_v28 }
 0x162   :  { %1117 = vst.msk [vmem:[#allocation10 + $0x78] sm:$0xf] %vm1086_vm1, %v1331_v29  ;;  %1149 = vst.msk [vmem:[#allocation10 + $0xf8] sm:$0xf] %vm1086_vm1, %v1363_v30  ;;  %v1332_v39 = vpack.c.bf16 %v797_v31, %v797_v31  ;;  %v1364_v33 = vpack.c.bf16 %v829_v32, %v829_v32 }
 0x163   :  { %1115 = vst.msk [vmem:[#allocation10 + $0x70] sm:$0xf] %vm1086_vm1, %v1329_v34  ;;  %1147 = vst.msk [vmem:[#allocation10 + $0xf0] sm:$0xf] %vm1086_vm1, %v1361_v36  ;;  %v1330_v40 = vpack.c.bf16 %v795_v37, %v795_v37  ;;  %v1362_v41 = vpack.c.bf16 %v827_v38, %v827_v38 }
 0x164   :  { %1118 = vst.msk [vmem:[#allocation10 + $0x7c] sm:$0xf] %vm1086_vm1, %v1332_v39  ;;  %1150 = vst.msk [vmem:[#allocation10 + $0xfc] sm:$0xf] %vm1086_vm1, %v1364_v33 }
 0x165   :  { %1116 = vst.msk [vmem:[#allocation10 + $0x74] sm:$0xf] %vm1086_vm1, %v1330_v40  ;;  %1148 = vst.msk [vmem:[#allocation10 + $0xf4] sm:$0xf] %vm1086_vm1, %v1362_v41 }
 0x166   :  { %1605 = shalt.err (!%p1602_p8)
}
 0x167   :  { %s1606_s17 = scalar_lea.hbm %s1964_s4, 4096 }
 0x168   :  { %p1607_p9 = scmp.ne.s32.totalorder %s1964_s4, %s1606_s17  ;;  %p1610_p10 = scmp.lt.u32.totalorder %s1606_s17, %s1964_s4 }
 0x16a   :  { %p1612_p11 = pnand %p1610_p10, %p1607_p9 }
 0x16c   :  { %1615 = shalt.err (!%p1612_p11)
}
 0x16d   :  { %1162 = dma.vmem_to_hbm [thread:$0]  %s1157_s13, 4096, %s1964_s4, [#allocation4], %s1626_s27, %s1626_s27, %s1627_s28  }
 0x16e   :  { %1622 = dma.done.wait [#allocation4], 4096  }
 0x16f   :  { %1623 = vsyncadd [#allocation4], 4294963200 }
 0x170   :  { %1166 = vsyncpa [#allocation3], 1 }
 0x171   :  { %1167 = vsyncpa [#allocation6], 1 }
 0x172   :  { %1168 = vsyncpa [#allocation9], 1 }
 0x173   :  { %1169 = vsyncpa [#allocation4], 1 }

</bundles_post_ra>
